<compile_context>
chip_gen: v6e
topology: v6e:2x2x1
jax: 0.10.0
libtpu: 0.0.40
codegen_flags: <defaults>
</compile_context>

<pallas_src>
import jax
import jax.numpy as jnp
from jax import lax
from jax.experimental import pallas as pl
from jax.experimental.pallas import tpu as pltpu

NEG_SLOPE = 0.2
EPS = 1e-5
KH = KW = 4
STRIDE = 2
PAD = 1


def _round_up(a, b):
    return (a + b - 1) // b * b


# ---------- Pass 1: conv matmul tile + per-feature partial statistics ----------
def _conv_stats_kernel(p_ref, w_ref, y_ref, sum_ref, ssq_ref):
    # p_ref: (TILE_M, K_pad) activated patches (compute dtype)
    # w_ref: (K_pad, F_pad) conv weight (compute dtype), VMEM-resident across grid
    # y_ref: (TILE_M, F_pad) f32 conv output tile
    # sum_ref/ssq_ref: (1, F_pad) f32 resident accumulators (constant block index)
    @pl.when(pl.program_id(0) == 0)
    def _():
        sum_ref[...] = jnp.zeros_like(sum_ref)
        ssq_ref[...] = jnp.zeros_like(ssq_ref)

    y = jnp.dot(p_ref[...], w_ref[...], preferred_element_type=jnp.float32)
    y_ref[...] = y
    sum_ref[...] += jnp.sum(y, axis=0, keepdims=True)
    ssq_ref[...] += jnp.sum(y * y, axis=0, keepdims=True)


# ---------- Pass 2: apply folded BatchNorm affine (embarrassingly parallel) ----------
def _bn_apply_kernel(y_ref, scale_ref, shift_ref, o_ref):
    o_ref[...] = (y_ref[...] * scale_ref[...] + shift_ref[...]).astype(o_ref.dtype)


def _im2col(x_pad, kh, kw, stride):
    # x_pad: (N, C, Hp, Wp) -> (N*Ho*Wo, C*kh*kw); K ordered (c, kh, kw) like PyTorch weights
    N, C, Hp, Wp = x_pad.shape
    Ho = (Hp - kh) // stride + 1
    Wo = (Wp - kw) // stride + 1
    cols = []
    for i in range(kh):
        for j in range(kw):
            cols.append(x_pad[:, :, i:i + Ho * stride:stride, j:j + Wo * stride:stride])
    p = jnp.stack(cols, axis=0).reshape(kh, kw, N, C, Ho, Wo)
    p = p.transpose(2, 4, 5, 3, 0, 1)            # (N, Ho, Wo, C, kh, kw)
    return p.reshape(N * Ho * Wo, C * kh * kw), Ho, Wo


def conv_block_forward(x, weight, gamma, beta, *, compute_dtype=jnp.bfloat16, tile_m=None):
    """x: (N, C, H, W) f32; weight: (F, C, 4, 4); gamma/beta: (F,).
    Returns (y, x) with y: (N, F, H//2, W//2) f32, matching the PyTorch module
    (training-mode BatchNorm using batch statistics)."""
    N, C, H, W = x.shape
    F = weight.shape[0]

    # LeakyReLU BEFORE padding / im2col (each input element lands in ~4 patch rows,
    # so activating the patches would do ~4x the work and touch ~4x the bytes).
    a = jnp.where(x >= 0, x, NEG_SLOPE * x).astype(compute_dtype)
    a_pad = jnp.pad(a, ((0, 0), (0, 0), (PAD, PAD), (PAD, PAD)), mode="reflect")

    # TODO(synk): avoid materializing the im2col patches in HBM by DMA-ing halo'd input
    # tiles (memory_space=pl.ANY + make_async_copy) and building (TILE_M, K) patch tiles
    # in VMEM inside the kernel; for now the patches are built by XLA (bf16 halves the traffic).
    patches, Ho, Wo = _im2col(a_pad, KH, KW, STRIDE)          # (M, K)
    M, K = patches.shape

    # Lane-dense zero padding: padded K columns / weight rows contribute 0 to the dot,
    # padded F columns / M rows contribute 0 to the BN sums; all are sliced off at the end.
    K_pad = _round_up(K, 128)
    F_pad = _round_up(F, 128)
    if tile_m is None:
        tile_m = 256 if M >= 256 else max(16, _round_up(M, 16))
    M_pad = _round_up(M, tile_m)
    grid_m = M_pad // tile_m

    patches = jnp.pad(patches, ((0, M_pad - M), (0, K_pad - K)))
    w2 = jnp.pad(weight.reshape(F, K).T,
                 ((0, K_pad - K), (0, F_pad - F))).astype(compute_dtype)   # (K_pad, F_pad)

    # ---- Pass 1: tiled conv + per-feature sum / sum-of-squares (f32 accumulators) ----
    y_flat, fsum, fssq = pl.pallas_call(
        _conv_stats_kernel,
        out_shape=(
            jax.ShapeDtypeStruct((M_pad, F_pad), jnp.float32),
            jax.ShapeDtypeStruct((1, F_pad), jnp.float32),
            jax.ShapeDtypeStruct((1, F_pad), jnp.float32),
        ),
        grid=(grid_m,),
        in_specs=[
            pl.BlockSpec((tile_m, K_pad), lambda i: (i, 0)),
            pl.BlockSpec((K_pad, F_pad), lambda i: (0, 0)),   # weight resident in VMEM
        ],
        out_specs=(
            pl.BlockSpec((tile_m, F_pad), lambda i: (i, 0)),
            pl.BlockSpec((1, F_pad), lambda i: (0, 0)),       # resident accumulator
            pl.BlockSpec((1, F_pad), lambda i: (0, 0)),       # resident accumulator
        ),
        compiler_params=pltpu.CompilerParams(dimension_semantics=("arbitrary",)),
    )(patches, w2)

    # Tiny (1, F_pad) per-feature math: fold training-mode BN into scale/shift in JAX.
    mean = fsum / M                                           # zero-padded rows add nothing
    var = jnp.maximum(fssq / M - mean * mean, 0.0)            # biased variance (PyTorch BN)
    inv = lax.rsqrt(var + EPS)
    g2 = jnp.pad(gamma.astype(jnp.float32), (0, F_pad - F)).reshape(1, F_pad)
    b2 = jnp.pad(beta.astype(jnp.float32), (0, F_pad - F)).reshape(1, F_pad)
    scale = g2 * inv
    shift = b2 - mean * scale

    # ---- Pass 2: elementwise normalize; "parallel" axis shards across v7x TensorCores ----
    y_norm = pl.pallas_call(
        _bn_apply_kernel,
        out_shape=jax.ShapeDtypeStruct((M_pad, F_pad), jnp.float32),
        grid=(grid_m,),
        in_specs=[
            pl.BlockSpec((tile_m, F_pad), lambda i: (i, 0)),
            pl.BlockSpec((1, F_pad), lambda i: (0, 0)),
            pl.BlockSpec((1, F_pad), lambda i: (0, 0)),
        ],
        out_specs=pl.BlockSpec((tile_m, F_pad), lambda i: (i, 0)),
        compiler_params=pltpu.CompilerParams(dimension_semantics=("parallel",)),
    )(y_flat, scale, shift)

    y = y_norm[:M, :F].reshape(N, Ho, Wo, F).transpose(0, 3, 1, 2)   # back to NCHW
    return y, x


def _reference(x, weight, gamma, beta, compute_dtype=jnp.float32):
    # Pure-JAX reference of the PyTorch module (training-mode BN).  `compute_dtype`
    # applies the same operand rounding the kernel uses (accumulation stays f32).
    a = jnp.where(x >= 0, x, NEG_SLOPE * x).astype(compute_dtype).astype(jnp.float32)
    w = weight.astype(compute_dtype).astype(jnp.float32)
    a_pad = jnp.pad(a, ((0, 0), (0, 0), (PAD, PAD), (PAD, PAD)), mode="reflect")
    y = lax.conv_general_dilated(
        a_pad, w, window_strides=(STRIDE, STRIDE), padding="VALID",
        dimension_numbers=("NCHW", "OIHW", "NCHW"))
    mean = jnp.mean(y, axis=(0, 2, 3), keepdims=True)
    var = jnp.mean((y - mean) ** 2, axis=(0, 2, 3), keepdims=True)
    yn = (y - mean) * lax.rsqrt(var + EPS)
    return yn * gamma.reshape(1, -1, 1, 1) + beta.reshape(1, -1, 1, 1)


if __name__ == "__main__":
    key = jax.random.PRNGKey(0)
    N, C, H, W = 2, 4, 16, 16
    FEATURES = 8

    kx, kw, kg, kb = jax.random.split(key, 4)
    x = jax.random.normal(kx, (N, C, H, W), dtype=jnp.float32)
    weight = 0.1 * jax.random.normal(kw, (FEATURES, C, KH, KW), dtype=jnp.float32)
    gamma = 1.0 + 0.1 * jax.random.normal(kg, (FEATURES,), dtype=jnp.float32)
    beta = 0.1 * jax.random.normal(kb, (FEATURES,), dtype=jnp.float32)

    # Performance path: bf16 MXU operands, f32 accumulation/stats.  tile_m=64 forces a
    # multi-tile grid (M = 2*8*8 = 128) so the two-pass BN accumulation is exercised.
    y_bf16, x_out = conv_block_forward(x, weight, gamma, beta,
                                       compute_dtype=jnp.bfloat16, tile_m=64)
    # Full-precision path for tight validation against the f32 reference.
    y_f32, _ = conv_block_forward(x, weight, gamma, beta,
                                  compute_dtype=jnp.float32, tile_m=64)
    jax.block_until_ready((y_bf16, y_f32, x_out))

    assert y_bf16.shape == (N, FEATURES, H // 2, W // 2)
    assert y_f32.shape == (N, FEATURES, H // 2, W // 2)
    assert jnp.allclose(x_out, x)

    ref_f32 = _reference(x, weight, gamma, beta, compute_dtype=jnp.float32)
    ref_bf16 = _reference(x, weight, gamma, beta, compute_dtype=jnp.bfloat16)
    assert jnp.allclose(y_f32, ref_f32, atol=1e-4, rtol=1e-4), \
        float(jnp.max(jnp.abs(y_f32 - ref_f32)))
    assert jnp.allclose(y_bf16, ref_bf16, atol=2e-3, rtol=2e-3), \
        float(jnp.max(jnp.abs(y_bf16 - ref_bf16)))

    print("KERNEL_OK")
</pallas_src>

<mosaic_0001>
module attributes {stable_mosaic.version = 11 : i64} {
  func.func @_conv_stats_kernel(%arg0: i32, %arg1: memref<64x128xbf16, #tpu.memory_space<vmem>>, %arg2: memref<128x128xbf16, #tpu.memory_space<vmem>>, %arg3: memref<64x128xf32, #tpu.memory_space<vmem>>, %arg4: memref<1x128xf32, #tpu.memory_space<vmem>>, %arg5: memref<1x128xf32, #tpu.memory_space<vmem>>) attributes {dimension_semantics = [#tpu.dimension_semantics<arbitrary>], iteration_bounds = array<i64: 2>, scalar_prefetch = 0 : i64, scratch_operands = 0 : i64, tpu.core_type = #tpu.core_type<tc>, window_params = [{transform_indices = @transform_0, window_bounds = array<i64: 64, 128>}, {pipeline_mode = #tpu.pipeline_mode<synchronous>, transform_indices = @transform_1, window_bounds = array<i64: 128, 128>}, {transform_indices = @transform_2, window_bounds = array<i64: 64, 128>}, {pipeline_mode = #tpu.pipeline_mode<synchronous>, transform_indices = @transform_3, window_bounds = array<i64: 1, 128>}, {pipeline_mode = #tpu.pipeline_mode<synchronous>, transform_indices = @transform_4, window_bounds = array<i64: 1, 128>}]} {
    %c0_i32 = arith.constant 0 : i32
    %0 = arith.cmpi eq, %arg0, %c0_i32 : i32
    %1 = arith.extui %0 : i1 to i32
    %c0_i32_0 = arith.constant 0 : i32
    %2 = arith.cmpi ne, %1, %c0_i32_0 : i32
    scf.if %2 {
      %cst_16 = arith.constant 0.000000e+00 : f32
      %18 = vector.broadcast %cst_16 : f32 to vector<1x128xf32>
      %c0_17 = arith.constant 0 : index
      %c0_18 = arith.constant 0 : index
      %19 = vector.load %arg4[%c0_17, %c0_18] : memref<1x128xf32, #tpu.memory_space<vmem>>, vector<1x128xf32>
      tpu.vector_store %arg4[%c0_17, %c0_18], %18 {strides = array<i32>} : memref<1x128xf32, #tpu.memory_space<vmem>>, vector<1x128xf32>,
      %cst_19 = arith.constant 0.000000e+00 : f32
      %20 = vector.broadcast %cst_19 : f32 to vector<1x128xf32>
      %c0_20 = arith.constant 0 : index
      %c0_21 = arith.constant 0 : index
      %21 = vector.load %arg5[%c0_20, %c0_21] : memref<1x128xf32, #tpu.memory_space<vmem>>, vector<1x128xf32>
      tpu.vector_store %arg5[%c0_20, %c0_21], %20 {strides = array<i32>} : memref<1x128xf32, #tpu.memory_space<vmem>>, vector<1x128xf32>,
    } else {
    }
    %c0 = arith.constant 0 : index
    %c0_1 = arith.constant 0 : index
    %3 = vector.load %arg1[%c0, %c0_1] : memref<64x128xbf16, #tpu.memory_space<vmem>>, vector<64x128xbf16>
    %c0_2 = arith.constant 0 : index
    %c0_3 = arith.constant 0 : index
    %4 = vector.load %arg2[%c0_2, %c0_3] : memref<128x128xbf16, #tpu.memory_space<vmem>>, vector<128x128xbf16>
    %cst = arith.constant dense<0.000000e+00> : vector<64x128xf32>
    %5 = tpu.matmul %3, %4, %cst {dimension_numbers = #tpu.dot_dimension_numbers<[1], [0], [0], [1], [0, 0, 1, 1], [], []>} : vector<64x128xbf16>, vector<128x128xbf16>, vector<64x128xf32> -> vector<64x128xf32>
    %c0_4 = arith.constant 0 : index
    %c0_5 = arith.constant 0 : index
    %6 = vector.load %arg3[%c0_4, %c0_5] : memref<64x128xf32, #tpu.memory_space<vmem>>, vector<64x128xf32>
    tpu.vector_store %arg3[%c0_4, %c0_5], %5 {strides = array<i32>} : memref<64x128xf32, #tpu.memory_space<vmem>>, vector<64x128xf32>,
    %c0_6 = arith.constant 0 : index
    %c0_7 = arith.constant 0 : index
    %7 = vector.load %arg4[%c0_6, %c0_7] : memref<1x128xf32, #tpu.memory_space<vmem>>, vector<1x128xf32>
    %cst_8 = arith.constant dense<0.000000e+00> : vector<128xf32>
    %8 = vector.multi_reduction <add>, %5, %cst_8 [0] : vector<64x128xf32> to vector<128xf32>
    %9 = vector.shape_cast %8 : vector<128xf32> to vector<1x128xf32>
    %10 = arith.addf %7, %9 : vector<1x128xf32>
    %c0_9 = arith.constant 0 : index
    %c0_10 = arith.constant 0 : index
    %11 = vector.load %arg4[%c0_9, %c0_10] : memref<1x128xf32, #tpu.memory_space<vmem>>, vector<1x128xf32>
    tpu.vector_store %arg4[%c0_9, %c0_10], %10 {strides = array<i32>} : memref<1x128xf32, #tpu.memory_space<vmem>>, vector<1x128xf32>,
    %c0_11 = arith.constant 0 : index
    %c0_12 = arith.constant 0 : index
    %12 = vector.load %arg5[%c0_11, %c0_12] : memref<1x128xf32, #tpu.memory_space<vmem>>, vector<1x128xf32>
    %13 = arith.mulf %5, %5 : vector<64x128xf32>
    %cst_13 = arith.constant dense<0.000000e+00> : vector<128xf32>
    %14 = vector.multi_reduction <add>, %13, %cst_13 [0] : vector<64x128xf32> to vector<128xf32>
    %15 = vector.shape_cast %14 : vector<128xf32> to vector<1x128xf32>
    %16 = arith.addf %12, %15 : vector<1x128xf32>
    %c0_14 = arith.constant 0 : index
    %c0_15 = arith.constant 0 : index
    %17 = vector.load %arg5[%c0_14, %c0_15] : memref<1x128xf32, #tpu.memory_space<vmem>>, vector<1x128xf32>
    tpu.vector_store %arg5[%c0_14, %c0_15], %16 {strides = array<i32>} : memref<1x128xf32, #tpu.memory_space<vmem>>, vector<1x128xf32>,
    return
  }
  func.func @transform_0(%arg0: i32) -> (i32, i32) {
    %c0_i32 = arith.constant 0 : i32
    %c0_i32_0 = arith.constant 0 : i32
    return %arg0, %c0_i32 : i32, i32
  }
  func.func @transform_1(%arg0: i32) -> (i32, i32) {
    %c0_i32 = arith.constant 0 : i32
    %c0_i32_0 = arith.constant 0 : i32
    %c0_i32_1 = arith.constant 0 : i32
    return %c0_i32, %c0_i32_0 : i32, i32
  }
  func.func @transform_2(%arg0: i32) -> (i32, i32) {
    %c0_i32 = arith.constant 0 : i32
    %c0_i32_0 = arith.constant 0 : i32
    return %arg0, %c0_i32 : i32, i32
  }
  func.func @transform_3(%arg0: i32) -> (i32, i32) {
    %c0_i32 = arith.constant 0 : i32
    %c0_i32_0 = arith.constant 0 : i32
    %c0_i32_1 = arith.constant 0 : i32
    return %c0_i32, %c0_i32_0 : i32, i32
  }
  func.func @transform_4(%arg0: i32) -> (i32, i32) {
    %c0_i32 = arith.constant 0 : i32
    %c0_i32_0 = arith.constant 0 : i32
    %c0_i32_1 = arith.constant 0 : i32
    return %c0_i32, %c0_i32_0 : i32, i32
  }
}

</mosaic_0001>

<bundles_post_ra>
// kernel: tpu_custom_call.1
= control target key start
LH: loop header
LB: loop body
LE: loop exit
PB: predicated region body
PF: predicated region fallthrough
CT: control target
= control target key end

     0   :  { %10 = vsyncpa [#allocation3], 0  ;;  %s1193_s0 = inlined_call_operand.hbm [shape: bf16[128,128], index: 0, kind: input, shape index: {}]   ;;  %s1194_s1 = inlined_call_operand.hbm [shape: bf16[128,128], index: 1, kind: input, shape index: {}]   ;;  %s1195_s2 = inlined_call_operand.hbm [shape: f32[128,128], index: 2, kind: output, shape index: {0}]   ;;  %s1196_s3 = inlined_call_operand.hbm [shape: f32[1,128], index: 3, kind: output, shape index: {1}]   ;;  %s1197_s4 = inlined_call_operand.hbm [shape: f32[1,128], index: 4, kind: output, shape index: {2}]  }
   0x1   :  { %12 = vsyncpa [#allocation3 + $0x1], 0 }
   0x2   :  { %13 = vsyncpa [#allocation6], 0 }
   0x3   :  { %14 = vsyncpa [#allocation4], 0 }
   0x4   :  { %16 = vsyncpa [#allocation4 + $0x1], 0 }
   0x5   :  { %17 = vsyncpa [#allocation9], 0  ;;  %s971_s15 = smov 0   ;;  %s973_s16 = smov 0  }
   0x6   :  { %s975_s17 = smov 0   ;;  %s977_s18 = smov 0  }
   0x7 LB: > { %s992_s19 = sadd.s32 4294967295, %s934_s18   ;;  %s585_s20 = sadd.s32 4294967294, %s934_s18   ;;  %s934_s18 = sphi %s977_s18, %s1226_s18   ;;  %s930_s17 = sphi %s975_s17, %s1225_s17   ;;  %s926_s16 = sphi %s973_s16, %s1224_s16   ;;  %s922_s15 = sphi %s971_s15, %s1223_s15  }
   0x8   : > { %p43_p0 = scmp.ne.s32.totalorder %s926_s16, %s922_s15  ;;  %p1198_p1 = scmp.eq.s32.totalorder %s992_s19, 0 }
   0x9   : > { %p94_p3 = scmp.eq.s32.totalorder %s585_s20, 1  ;;  %p586_p5 = scmp.ge.s32.totalorder %s934_s18, 1 }
   0xa   : > { %p1001_p4 = por %p1198_p1, %p43_p0  ;;  %p143_p7 = scmp.lt.s32.totalorder %s934_s18, 3 }
   0xb   : > { %p1006_p6 = por %p94_p3, %p43_p0  ;;  %s936_s24 = smov [#allocation5]  }
   0xc   : > { %s1202_s21 = scalar_select %p1001_p4, 1, 0 }
   0xd   : > { %s1203_s22 = scalar_select %p1006_p6, 1, 0 }
   0xe   : > { %p1012_p9 = pnand %p586_p5, %p143_p7  ;;  %s155_s25 = sshll.u32 %s936_s24, 4  ;;  %s156_s25 = int_to_ptr.vmem [resolvable:$true] %s155_s25 }
   0xf   : > { %s1026_s27 = sadd.s32 1, %s934_s18   ;;  %s30_s28 = sadd.s32 1, %s930_s17 }
  0x10   : > { %s1204_s23 = scalar_select %p1012_p9, 1, 0 }
  0x11   : > { %p688_p10 = pneg %p1012_p9  ;;  %s27_s29 = ssub.s32 %s934_s18, %s1026_s27 }
  0x12   : > { %s771_s30 = scalar_lea.vmem %s156_s25, 1024  ;;  %p779_p7 = scmp.lt.s32.totalorder %s156_s25, %s156_s25 }
  0x13   : > { %p1021_p12 = pnand %p688_p10, %p1198_p1  ;;  %p772_p0 = scmp.ne.s32.totalorder %s156_s25, %s771_s30 }
  0x14   : > { %p780_p8 = scmp.lt.s32.totalorder %s771_s30, %s771_s30 }
  0x15   : > { %p762_p13 = pneg %p1021_p12 }
  0x16   : > { %p781_p11 = por %p780_p8, %p779_p7 }
  0x17   : > { %p774_p3 = pnand %p772_p0, %p762_p13 }
  0x19   : > { %p775_p5 = pneg %p774_p3 }
  0x1b   : > { %p782_p2 = pnand %p781_p11, %p775_p5 }
  0x1d   : > { %785 = shalt.err (!%p782_p2)
}
  0x1e   : > { %s937_s5 = smov 64   ;;  %s938_s6 = smov 4  }
  0x1f   : > { %691 = dma.hbm_to_vmem [thread:$0]  (!%p1021_p12), %s1194_s1, 1024, %s156_s25, [#allocation6], %s937_s5, %s937_s5, %s938_s6  }
  0x20   : > { %p28_p2 = scmp.eq.s32.totalorder %s27_s29, 0  ;;  %p37_p8 = scmp.ne.s32.totalorder %s930_s17, %s926_s16 }
  0x21   : > { %p38_p10 = scmp.eq.s32.totalorder %s934_s18, 0  ;;  %p701_p11 = scmp.lt.s32.totalorder %s934_s18, 2 }
  0x22   : > { %s1046_s9 = scalar_select %p28_p2, %s930_s17, %s30_s28  }
  0x23   : > { %p39_p13 = por %p38_p10, %p37_p8  ;;  %p1206_p0 = scmp.eq.s32.totalorder %s992_s19, 1 }
  0x24   : > { %s169_s11 = sand.u32 1, %s930_s17   ;;  %s618_s12 = sshll.u32 %s934_s18, 9 }
  0x25   : > { %p1050_p3 = por %p1206_p0, %p37_p8  ;;  %s589_s13 = sshll.u32 %s169_s11, 5 }
  0x26   : > { %s1059_s24 = scalar_lea.hbm %s1193_s0, %s618_s12  ;;  %s173_s25 = scalar_lea.vmem [#allocation2], %s589_s13 }
  0x27   : > { %s1207_s10 = scalar_select %p1050_p3, 1, 0 }
  0x28   : > { %s180_s26 = sshll.u32 %s173_s25, 4  ;;  %p1061_p12 = pnand %p701_p11, %p39_p13  ;;  %s1065_s26 = int_to_ptr.vmem [resolvable:$true] %s180_s26 }
  0x29   : > { %s1067_s29 = scalar_lea.sflag [#allocation3], %s169_s11  ;;  %s786_s30 = scalar_lea.hbm %s1059_s24, 512 }
  0x2a   : > { %p787_p5 = scmp.ne.s32.totalorder %s1059_s24, %s786_s30  ;;  %p788_p7 = pneg %p1061_p12 }
  0x2b   : > { %s791_s12 = scalar_lea.hbm %s1193_s0, 1024  ;;  %p792_p10 = scmp.lt.s32.totalorder %s1059_s24, %s1193_s0 }
  0x2c   : > { %p789_p2 = pnand %p788_p7, %p787_p5  ;;  %p793_p11 = scmp.lt.s32.totalorder %s791_s12, %s786_s30 }
  0x2e   : > { %p790_p8 = pneg %p789_p2  ;;  %p794_p13 = por %p793_p11, %p792_p10 }
  0x30   : > { %p795_p0 = pnand %p794_p13, %p790_p8 }
  0x32   : > { %798 = shalt.err (!%p795_p0)
}
  0x33   : > { %s799_s11 = scalar_lea.vmem %s1065_s26, 512  ;;  %s939_s20 = smov [#allocation2]  }
  0x34   : > { %p800_p1 = scmp.ne.s32.totalorder %s1065_s26, %s799_s11  ;;  %s804_s25 = sshll.u32 %s939_s20, 4  ;;  %s805_s25 = int_to_ptr.vmem [resolvable:$false] %s804_s25 }
  0x35   : > { %s806_s7 = scalar_lea.vmem %s805_s25, 1024  ;;  %p807_p2 = scmp.lt.s32.totalorder %s1065_s26, %s805_s25 }
  0x36   : > { %p802_p6 = pnand %p800_p1, %p788_p7  ;;  %p808_p3 = scmp.lt.s32.totalorder %s806_s7, %s799_s11 }
  0x38   : > { %p803_p5 = pneg %p802_p6  ;;  %p809_p4 = por %p808_p3, %p807_p2 }
  0x3a   : > { %p810_p9 = pnand %p809_p4, %p803_p5 }
  0x3c   : > { %813 = shalt.err (!%p810_p9)
}
  0x3d   : > { %695 = dma.hbm_to_vmem [thread:$0]  (!%p1061_p12), %s1059_s24, 512, %s1065_s26, %s1067_s29, %s937_s5, %s937_s5, %s938_s6  }
  0x3e   : > { %p1209_p1 = scmp.ne.s32.totalorder %s1204_s23, 0 }
  0x3f   : > { %s1094_s30 = sand.u32 (!%p1209_p1), 1, %s926_s16   ;;  %p1210_p4 = scmp.ne.s32.totalorder (!%p1209_p1), %s1202_s21, 0 }
  0x40   : > { %192 = sbr.rel (%p1209_p1) target bundleno = 372 (0x174), region = 28  ;;  %s593_s8 = sshll.u32 (!%p1209_p1), %s1094_s30, 5 }
  0x41   : > { %s195_s12 = scalar_lea.sflag (!%p1209_p1), [#allocation3], %s1094_s30  ;;  %s1098_s13 = scalar_lea.vmem (!%p1209_p1), [#allocation2], %s593_s8 }
  0x45   : > { %905 = dma.done.wait (%p1210_p4), %s195_s12, 512  }
  0x46   : > { %907 = vsyncadd (%p1210_p4), %s195_s12, 4294966784  ;;  %p1211_p6 = scmp.eq.s32.totalorder %s992_s19, 0 }
  0x48   : > { %909 = dma.done.wait (%p1211_p6), [#allocation6], 1024   ;;  %p1212_p9 = pmov %p1211_p6 }
  0x49   : > { %s595_s23 = sshll.u32 %s1094_s30, 6  ;;  %p1213_p3 = scmp.ne.s32.totalorder %s992_s19, 0 }
  0x4a   : > { %911 = vsyncadd (%p1212_p9), [#allocation6], 4294966272  ;;  %s1109_s5 = scalar_lea.vmem [#allocation7], %s595_s23 }
  0x4b   : > { %233 = sbr.rel (%p1213_p3) target bundleno = 82 (0x52), region = 40 }
  0x50   : > { %v940_v0 = vmov 0.0  }
  0x51   : > { %234 = vst [vmem:[#allocation8] sm:$0x1] %v940_v0  ;;  %235 = vst [vmem:[#allocation10] sm:$0x1] %v940_v0 }
  0x52 PF: > { %v748_v1 = vld [vmem:[#allocation5 + $0x38] sm:$0xff]   ;;  %v749_v2 = vld [vmem:[#allocation5 + $0x30] sm:$0xff]   ;;  %v750_v3 = vld [vmem:[#allocation5 + $0x28] sm:$0xff]   ;;  %s619_s21 = sshll.u32 %s992_s19, 10  ;;  %s459_s6 = sshll.u32 %s1109_s5, 4  ;;  %s1128_s6 = int_to_ptr.vmem [resolvable:$true] %s459_s6 }
  0x53   : > { %632 = vmatprep.subr.bf16.mxu0 %v748_v1  ;;  %656 = vmatprep.subr.bf16.mxu1 %v748_v1  ;;  %v751_v4 = vld [vmem:[#allocation5 + $0x20] sm:$0xff]   ;;  %v758_v6 = vld [vmem:[%s1098_s13 + $0x10] sm:$0xff]   ;;  %v752_v7 = vld [vmem:[#allocation5 + $0x18] sm:$0xff]   ;;  %s1126_s28 = scalar_lea.hbm %s1195_s2, %s619_s21  ;;  %s446_s29 = scalar_lea.sflag [#allocation4], %s1094_s30 }
  0x54   : > { %633 = vmatpush3.bf16.msra.mxu0 %v748_v1  ;;  %664 = vmatpush3.bf16.msra.mxu1 %v748_v1  ;;  %v756_v5 = vld [vmem:[%s1098_s13] sm:$0xff]   ;;  %v753_v8 = vld [vmem:[#allocation5 + $0x10] sm:$0xff]   ;;  %v754_v9 = vld [vmem:[#allocation5 + $0x8] sm:$0xff]   ;;  %s814_s14 = scalar_lea.vmem %s1128_s6, 1024  ;;  %p1214_p7 = scmp.ne.s32.totalorder %s1207_s10, 0 }
  0x55   : > { %634 = vmatprep.subr.bf16.mxu0 %v749_v2  ;;  %657 = vmatprep.subr.bf16.mxu1 %v749_v2  ;;  %v755_v10 = vld [vmem:[#allocation5] sm:$0xff]   ;;  %v757_v11 = vld [vmem:[%s1098_s13 + $0x8] sm:$0xff]   ;;  %v759_v12 = vld [vmem:[%s1098_s13 + $0x18] sm:$0xff]   ;;  %p815_p12 = scmp.ne.s32.totalorder %s1128_s6, %s814_s14  ;;  %s941_s11 = smov [#allocation7]  }
  0x56   : > { %648 = vmatprep.mubr.bf16.mxu0 %v756_v5  ;;  %652 = vmatprep.mubr.bf16.mxu1 %v758_v6  ;;  %s818_s20 = sshll.u32 %s941_s11, 4  ;;  %s819_s20 = int_to_ptr.vmem [resolvable:$false] %s818_s20 }
  0x57   : > { %p816_p8 = pnand %p815_p12, %p1214_p7  ;;  %s820_s25 = scalar_lea.vmem %s819_s20, 2048 }
  0x58   : > { %635 = vmatpush3.bf16.msra.mxu0 %v749_v2  ;;  %665 = vmatpush3.bf16.msra.mxu1 %v749_v2  ;;  %p821_p11 = scmp.lt.s32.totalorder %s1128_s6, %s819_s20  ;;  %p822_p13 = scmp.lt.s32.totalorder %s820_s25, %s814_s14 }
  0x59   : > { %636 = vmatprep.subr.bf16.mxu0 %v750_v3  ;;  %658 = vmatprep.subr.bf16.mxu1 %v750_v3  ;;  %p817_p10 = pneg %p816_p8 }
  0x5a   : > { %p823_p0 = por %p822_p13, %p821_p11 }
  0x5c   : > { %637 = vmatpush3.bf16.msra.mxu0 %v750_v3  ;;  %666 = vmatpush3.bf16.msra.mxu1 %v750_v3  ;;  %p824_p5 = pnand %p823_p0, %p817_p10 }
  0x5d   : > { %638 = vmatprep.subr.bf16.mxu0 %v751_v4  ;;  %659 = vmatprep.subr.bf16.mxu1 %v751_v4 }
  0x60   : > { %639 = vmatpush3.bf16.msra.mxu0 %v751_v4  ;;  %667 = vmatpush3.bf16.msra.mxu1 %v751_v4 }
  0x61   : > { %640 = vmatprep.subr.bf16.mxu0 %v752_v7  ;;  %660 = vmatprep.subr.bf16.mxu1 %v752_v7 }
  0x64   : > { %641 = vmatpush3.bf16.msra.mxu0 %v752_v7  ;;  %668 = vmatpush3.bf16.msra.mxu1 %v752_v7 }
  0x65   : > { %642 = vmatprep.subr.bf16.mxu0 %v753_v8  ;;  %661 = vmatprep.subr.bf16.mxu1 %v753_v8 }
  0x68   : > { %643 = vmatpush3.bf16.msra.mxu0 %v753_v8  ;;  %669 = vmatpush3.bf16.msra.mxu1 %v753_v8 }
  0x69   : > { %644 = vmatprep.subr.bf16.mxu0 %v754_v9  ;;  %662 = vmatprep.subr.bf16.mxu1 %v754_v9 }
  0x6c   : > { %645 = vmatpush3.bf16.msra.mxu0 %v754_v9  ;;  %670 = vmatpush3.bf16.msra.mxu1 %v754_v9 }
  0x6d   : > { %646 = vmatprep.subr.bf16.mxu0 %v755_v10  ;;  %663 = vmatprep.subr.bf16.mxu1 %v755_v10 }
  0x70   : > { %647 = vmatpush3.bf16.msra.mxu0 %v755_v10  ;;  %671 = vmatpush3.bf16.msra.mxu1 %v755_v10 }
  0x73   : > { %649 = vmatmul.mubr.bf16.vlgmr.msra.gmra.mxu0 %v757_v11  ;;  %653 = vmatmul.mubr.bf16.vlgmr.msra.gmra.mxu1 %v759_v12 }
 0x133   : > { %v650_v13 = vpop.f32.mrf.mxu0  ;;  %v654_v14 = vpop.f32.mrf.mxu1 }
 0x134   : > { %399 = vst [vmem:[%s1109_s5 + $0x10] sm:$0xff] %v650_v13  ;;  %403 = vst [vmem:[%s1109_s5 + $0x30] sm:$0xff] %v654_v14 }
 0x135   : > { %v366_v15 = vpop.f32.mrf.mxu0  ;;  %v382_v16 = vpop.f32.mrf.mxu1 }
 0x136   : > { %397 = vst [vmem:[%s1109_s5] sm:$0xff] %v366_v15  ;;  %401 = vst [vmem:[%s1109_s5 + $0x20] sm:$0xff] %v382_v16  ;;  %v422_v21 = vmul.f32 %v366_v15, %v366_v15 }
 0x137   : > { %v651_v17 = vpop.f32.mrf.mxu0  ;;  %v655_v18 = vpop.f32.mrf.mxu1 }
 0x138   : > { %400 = vst [vmem:[%s1109_s5 + $0x18] sm:$0xff] %v651_v17  ;;  %404 = vst [vmem:[%s1109_s5 + $0x38] sm:$0xff] %v655_v18 }
 0x139   : > { %v369_v19 = vpop.f32.mrf.mxu0  ;;  %v385_v20 = vpop.f32.mrf.mxu1 }
 0x13a   : > { %398 = vst [vmem:[%s1109_s5 + $0x8] sm:$0xff] %v369_v19  ;;  %v406_v22 = vadd.f32 %v369_v19, %v366_v15  ;;  %v423_v23 = vmul.f32 %v369_v19, %v369_v19  ;;  %402 = vst [vmem:[%s1109_s5 + $0x28] sm:$0xff] %v385_v20 }
 0x13b   : > { %827 = shalt.err (!%p824_p5)
}
 0x13c   : > { %s828_s7 = scalar_lea.hbm %s1126_s28, 1024  ;;  %s832_s13 = scalar_lea.hbm %s1195_s2, 2048 }
 0x13d   : > { %p829_p2 = scmp.ne.s32.totalorder %s1126_s28, %s828_s7  ;;  %p833_p6 = scmp.lt.s32.totalorder %s1126_s28, %s1195_s2 }
 0x13e   : > { %p834_p9 = scmp.lt.s32.totalorder %s832_s13, %s828_s7 }
 0x13f   : > { %p830_p1 = pnand %p829_p2, %p1214_p7 }
 0x140   : > { %p835_p3 = por %p834_p9, %p833_p6 }
 0x141   : > { %p831_p4 = pneg %p830_p1 }
 0x143   : > { %p836_p12 = pnand %p835_p3, %p831_p4 }
 0x145   : > { %839 = shalt.err (!%p836_p12)
}
 0x146   : > { %s942_s21 = smov 128   ;;  %s943_s24 = smov 8   ;;  %v424_v24 = vmul.f32 %v650_v13, %v650_v13  ;;  %v407_v25 = vadd.f32 %v650_v13, %v406_v22  ;;  %v430_v26 = vadd.f32 %v423_v23, %v422_v21  ;;  %v425_v27 = vmul.f32 %v651_v17, %v651_v17  ;;  %v405_v52 = vld [vmem:[#allocation8] sm:$0x1]  ;;  %v421_v55 = vld [vmem:[#allocation10] sm:$0x1] }
 0x147   : > { %678 = dma.vmem_to_hbm [thread:$0]  (%p1214_p7), %s1128_s6, 1024, %s1126_s28, %s446_s29, %s942_s21, %s942_s21, %s943_s24   ;;  %v426_v30 = vmul.f32 %v382_v16, %v382_v16  ;;  %v427_v34 = vmul.f32 %v385_v20, %v385_v20  ;;  %v428_v36 = vmul.f32 %v654_v14, %v654_v14  ;;  %v429_v39 = vmul.f32 %v655_v18, %v655_v18 }
 0x148   : > { %v431_v28 = vadd.f32 %v430_v26, %v424_v24  ;;  %v408_v29 = vadd.f32 %v651_v17, %v407_v25  ;;  %s944_s10 = smov [#allocation8]   ;;  %s945_s6 = smov [#allocation10]  }
 0x149   : > { %s473_s30 = sshll.u32 %s944_s10, 4  ;;  %s484_s26 = sshll.u32 %s945_s6, 4  ;;  %s474_s30 = int_to_ptr.vmem [resolvable:$true] %s473_s30  ;;  %s485_s26 = int_to_ptr.vmem [resolvable:$true] %s484_s26 }
 0x14a   : > { %v409_v31 = vadd.f32 %v408_v29, %v382_v16  ;;  %v432_v32 = vadd.f32 %v431_v28, %v425_v27  ;;  %s840_s28 = scalar_lea.vmem %s474_s30, 16  ;;  %p1215_p8 = scmp.eq.s32.totalorder %s992_s19, 1 }
 0x14b   : > { %p841_p7 = scmp.ne.s32.totalorder %s474_s30, %s840_s28  ;;  %s846_s29 = scalar_lea.vmem %s474_s30, 32 }
 0x14c   : > { %v410_v33 = vadd.f32 %v409_v31, %v385_v20  ;;  %v433_v35 = vadd.f32 %v432_v32, %v426_v30  ;;  %p847_p13 = scmp.lt.s32.totalorder %s474_s30, %s474_s30  ;;  %p848_p0 = scmp.lt.s32.totalorder %s846_s29, %s840_s28 }
 0x14d   : > { %p842_p10 = pnand %p841_p7, %p1215_p8 }
 0x14e   : > { %v411_v37 = vadd.f32 %v654_v14, %v410_v33  ;;  %v434_v38 = vadd.f32 %v433_v35, %v427_v34  ;;  %p849_p5 = por %p848_p0, %p847_p13 }
 0x14f   : > { %p843_p11 = pneg %p842_p10 }
 0x150   : > { %v412_v40 = vadd.f32 %v655_v18, %v411_v37  ;;  %v435_v41 = vadd.f32 %v434_v38, %v428_v36 }
 0x151   : > { %p850_p2 = pnand %p849_p5, %p843_p11 }
 0x152   : > { %v413_v42 = vrot.slane %v412_v40, 4  ;;  %v436_v43 = vadd.f32 %v435_v41, %v429_v39 }
 0x154   : > { %v414_v44 = vadd.f32 %v413_v42, %v412_v40  ;;  %v437_v45 = vrot.slane %v436_v43, 4 }
 0x156   : > { %v415_v46 = vrot.slane %v414_v44, 2  ;;  %v438_v47 = vadd.f32 %v437_v45, %v436_v43 }
 0x158   : > { %v416_v48 = vadd.f32 %v415_v46, %v414_v44  ;;  %v439_v49 = vrot.slane %v438_v47, 2 }
 0x15a   : > { %v417_v50 = vrot.slane %v416_v48, 1  ;;  %v440_v51 = vadd.f32 %v439_v49, %v438_v47 }
 0x15c   : > { %v418_v53 = vadd.f32 %v417_v50, %v416_v48  ;;  %v441_v54 = vrot.slane %v440_v51, 1 }
 0x15e   : > { %v419_v56 = vadd.f32 %v418_v53, %v405_v52  ;;  %v442_v57 = vadd.f32 %v441_v54, %v440_v51 }
 0x160   : > { %420 = vst [vmem:[#allocation8] sm:$0x1] %v419_v56  ;;  %v443_v58 = vadd.f32 %v442_v57, %v421_v55 }
 0x161   : > { %853 = shalt.err (!%p850_p2)
}
 0x162   : > { %p1216_p1 = pmov %p1215_p8  ;;  %444 = vst [vmem:[#allocation10] sm:$0x1] %v443_v58  ;;  %s864_s20 = scalar_lea.vmem %s485_s26, 16 }
 0x163   : > { %p865_p4 = scmp.ne.s32.totalorder %s485_s26, %s864_s20  ;;  %s870_s25 = scalar_lea.vmem %s485_s26, 32 }
 0x164   : > { %680 = dma.vmem_to_hbm [thread:$0]  (%p1216_p1), %s474_s30, 16, %s1196_s3, [#allocation9]  }
 0x165   : > { %p1217_p6 = pmov %p1216_p1  ;;  %p871_p12 = scmp.lt.s32.totalorder %s485_s26, %s485_s26 }
 0x166   : > { %p872_p7 = scmp.lt.s32.totalorder %s870_s25, %s864_s20 }
 0x167   : > { %p866_p9 = pnand %p865_p4, %p1217_p6 }
 0x168   : > { %p873_p8 = por %p872_p7, %p871_p12 }
 0x169   : > { %p867_p3 = pneg %p866_p9 }
 0x16b   : > { %p874_p10 = pnand %p873_p8, %p867_p3 }
 0x16d   : > { %877 = shalt.err (!%p874_p10)
}
 0x16e   : > { %p1218_p11 = pmov %p1216_p1  ;;  %p1219_p13 = pmov %p1216_p1 }
 0x170   : > { %682 = dma.vmem_to_hbm [thread:$0]  (%p1218_p11), %s485_s26, 16, %s1197_s4, [#allocation9]  }
 0x171   : > { %913 = dma.done.wait (%p1219_p13), [#allocation9], 32   ;;  %p1220_p0 = pmov %p1216_p1 }
 0x173   : > { %915 = vsyncadd (%p1220_p0), [#allocation9], 4294967264 }
 0x174 PF: > { %s504_s12 = sand.u32 1, %s922_s15   ;;  %p1221_p5 = scmp.ne.s32.totalorder %s1203_s22, 0 }
 0x175   : > { %p1222_p2 = scmp.ge.s32.totalorder %s934_s18, 2  ;;  %s505_s13 = scalar_lea.sflag [#allocation4], %s504_s12 }
 0x177   : > { %p697_p1 = pnand %p1222_p2, %p1221_p5 }
 0x179   : > { %p698_p4 = pneg %p697_p1 }
 0x17b   : > { %917 = dma.done.wait (%p698_p4), %s505_s13, 1024  }
 0x17c   : > { %919 = vsyncadd (%p698_p4), %s505_s13, 4294966272  ;;  %p20_p6 = scmp.ge.s32.totalorder %s1026_s27, 4   ;;  %s1223_s15 = smov %s926_s16 }
 0x17d   : > { %s1224_s16 = smov %s930_s17  ;;  %s1225_s17 = smov %s1046_s9 }
 0x17e   : > { %s1226_s18 = smov %s1026_s27  ;;  %22 = sbr.rel (!%p20_p6) target bundleno = 7 (0x7), region = 97 }
 0x183   :  { %510 = vsyncpa [#allocation3], 1 }
 0x184   :  { %512 = vsyncpa [#allocation3 + $0x1], 1 }
 0x185   :  { %513 = vsyncpa [#allocation6], 1 }
 0x186   :  { %514 = vsyncpa [#allocation4], 1 }
 0x187   :  { %516 = vsyncpa [#allocation4 + $0x1], 1 }
 0x188   :  { %517 = vsyncpa [#allocation9], 1 }

</bundles_post_ra>
